<compile_context>
chip_gen: v7x
topology: tpu7x:2x2x1
jax: 0.10.0
libtpu: 0.0.40
codegen_flags: <defaults>
</compile_context>

<pallas_src>
import functools

import jax
import jax.numpy as jnp
from jax.experimental import pallas as pl
from jax.experimental.pallas import tpu as pltpu


def _post_encoder_kernel(x_ref, w_ref, b_ref, out_ref,
                         *, seq_len, bp, hidden, fc1, fc2):
    """Whole LSTM recurrence + FC head in one kernel invocation.

    x_ref  : (S*bp, H)   bf16, time-major, row t*bp + b; batch padded to bp=8
    w_ref  : (4, H, 4H)  bf16 packed weights:
               [0] W_ih^T fused (i/f/o columns pre-scaled by 0.5)
               [1] W_hh^T fused (same pre-scaling)
               [2] fc1 weight^T padded to (H, 4H)
               [3] fc2 weight^T padded to (H, 4H)
    b_ref  : (3, 1, 4H)  f32 packed biases:
               [0] b_ih + b_hh fused (i/f/o pre-scaled by 0.5)
               [1] fc1 bias padded      [2] fc2 bias padded
    out_ref: (bp, FC2)   f32
    """
    H = hidden

    # Weights loaded from VMEM once, held as values across the loop.
    wih = w_ref[0]                       # (H, 4H) bf16
    whh = w_ref[1]                       # (H, 4H) bf16
    w1 = w_ref[2][:, :fc1]               # (H, FC1) bf16 (one-time static slice)
    w2 = w_ref[3][:fc1, :fc2]            # (FC1, FC2) bf16

    b_lstm = b_ref[0]                    # (1, 4H) f32
    b1 = b_ref[1][:, :fc1]               # (1, FC1)
    b2 = b_ref[2][:, :fc2]               # (1, FC2)

    # ---- Hoisted input projection: ONE lane-dense matmul over all time steps,
    # ONE bias broadcast.  Reshape to (S, bp, 4H) is 8-row-slab tile aligned,
    # so xg[t] below grabs a whole (8,128) vreg with zero shuffle.
    x2d = x_ref[...]                                               # (S*bp, H) bf16
    xg = jnp.dot(x2d, wih, preferred_element_type=jnp.float32) + b_lstm
    xg = xg.reshape(seq_len, bp, 4 * H)                            # (S, bp, 4H) f32

    # Lane mask (computed once): gate order [i, f, g, o]; the g block uses tanh
    # directly, the others reconstruct sigmoid(x) = 0.5*(tanh(x/2)+1) — the /2
    # is pre-baked into the weight/bias columns at pack time.
    lane = jax.lax.broadcasted_iota(jnp.int32, (bp, 4 * H), 1)
    is_g = (lane >= 2 * H) & (lane < 3 * H)

    # ---- Recurrence, fully unrolled; h/c stay in vector registers (f32).
    h = jnp.zeros((bp, H), jnp.float32)
    c = jnp.zeros((bp, H), jnp.float32)
    for t in range(seq_len):
        pre = xg[t] + jnp.dot(h.astype(jnp.bfloat16), whh,
                              preferred_element_type=jnp.float32)  # (bp, 4H)
        y = jnp.tanh(pre)                                          # EUP #1
        act = jnp.where(is_g, y, 0.5 * (y + 1.0))                  # VPU filler
        i_g = act[:, 0 * H:1 * H]
        f_g = act[:, 1 * H:2 * H]
        g_g = act[:, 2 * H:3 * H]
        o_g = act[:, 3 * H:4 * H]
        c = f_g * c + i_g * g_g
        h = o_g * jnp.tanh(c)                                      # EUP #2

    # ---- FC head: fc2(dropout(relu(fc1(h_last)))); eval-mode dropout == identity.
    z1 = jnp.maximum(
        jnp.dot(h.astype(jnp.bfloat16), w1,
                preferred_element_type=jnp.float32) + b1, 0.0)
    z2 = jnp.dot(z1.astype(jnp.bfloat16), w2,
                 preferred_element_type=jnp.float32) + b2
    out_ref[...] = z2.astype(out_ref.dtype)


def pack_params(params):
    """One-time weight repacking (parameter-load time, NOT per forward call)."""
    H = params["w_hh"].shape[1]
    FC1 = params["w1"].shape[0]
    FC2 = params["w2"].shape[0]
    assert FC1 <= H and FC1 <= 4 * H and FC2 <= 4 * H, "packing layout limits"

    # Fused per-gate layout so the kernel computes x @ W with gates [i,f,g,o]
    # laid out on the 128-lane axis (4H == 128 for H == 32).
    wih = params["w_ih"].T                           # (H, 4H)
    whh = params["w_hh"].T                           # (H, 4H)
    b_lstm = params["b_ih"] + params["b_hh"]         # (4H,)

    # Pre-bake the /2 of sigmoid(x)=0.5*(tanh(x/2)+1) into the i/f/o columns.
    # Power-of-two scale => exact in both f32 and bf16.
    col = jnp.arange(4 * H)
    scale = jnp.where((col >= 2 * H) & (col < 3 * H), 1.0, 0.5).astype(jnp.float32)
    wih = wih * scale
    whh = whh * scale
    b_lstm = b_lstm * scale

    w1 = params["w1"].T                              # (H, FC1)
    w2 = params["w2"].T                              # (FC1, FC2)

    wpad = jnp.zeros((4, H, 4 * H), jnp.float32)
    wpad = wpad.at[0].set(wih).at[1].set(whh)
    wpad = wpad.at[2, :, :FC1].set(w1)
    wpad = wpad.at[3, :FC1, :FC2].set(w2)

    bpad = jnp.zeros((3, 1, 4 * H), jnp.float32)
    bpad = bpad.at[0, 0, :].set(b_lstm)
    bpad = bpad.at[1, 0, :FC1].set(params["b1"])
    bpad = bpad.at[2, 0, :FC2].set(params["b2"])

    return {"w": wpad.astype(jnp.bfloat16), "b": bpad, "fc1": FC1, "fc2": FC2}


@functools.partial(jax.jit, static_argnames=("fc1", "fc2"))
def post_encoder_forward(enc_output, w_pack, b_pack, *, fc1, fc2):
    """enc_output: (B, S, H) batch-first f32.  Returns (1, B, fc2)."""
    B, S, H = enc_output.shape
    bp = ((B + 7) // 8) * 8                          # pad batch to full sublanes

    # Per-call layout plumbing only (cheap XLA ops): time-major, batch padded,
    # flattened, cast to bf16 for the MXU.
    x = jnp.transpose(enc_output, (1, 0, 2))         # (S, B, H)
    x = jnp.pad(x, ((0, 0), (0, bp - B), (0, 0)))    # (S, bp, H)
    x2d = x.reshape(S * bp, H).astype(jnp.bfloat16)

    vmem = pl.BlockSpec(memory_space=pltpu.MemorySpace.VMEM)
    out = pl.pallas_call(
        functools.partial(_post_encoder_kernel, seq_len=S, bp=bp,
                          hidden=H, fc1=fc1, fc2=fc2),
        out_shape=jax.ShapeDtypeStruct((bp, fc2), jnp.float32),
        in_specs=[vmem, vmem, vmem],
        out_specs=vmem,
    )(x2d, w_pack, b_pack)

    return out[None, :B, :]                          # (1, B, fc2)


def _reference_forward(enc_output, params):
    """Pure-JAX f32 reference matching torch semantics (eval-mode dropout)."""
    B, S, H = enc_output.shape
    h = jnp.zeros((B, H), jnp.float32)
    c = jnp.zeros((B, H), jnp.float32)
    b_lstm = params["b_ih"] + params["b_hh"]
    for t in range(S):
        x_t = enc_output[:, t, :]
        gates = x_t @ params["w_ih"].T + h @ params["w_hh"].T + b_lstm
        i_g = jax.nn.sigmoid(gates[:, 0 * H:1 * H])
        f_g = jax.nn.sigmoid(gates[:, 1 * H:2 * H])
        g_g = jnp.tanh(gates[:, 2 * H:3 * H])
        o_g = jax.nn.sigmoid(gates[:, 3 * H:4 * H])
        c = f_g * c + i_g * g_g
        h = o_g * jnp.tanh(c)
    z1 = jnp.maximum(h @ params["w1"].T + params["b1"], 0.0)
    z2 = z1 @ params["w2"].T + params["b2"]
    return z2[None, :, :]


def _init_params(key, hidden, fc1_out, fc2_out):
    """Deterministic PyTorch-style uniform(-1/sqrt(H), 1/sqrt(H)) init."""
    ks = jax.random.split(key, 8)
    s = 1.0 / jnp.sqrt(hidden)
    u = lambda k, shape, sc: jax.random.uniform(k, shape, jnp.float32, -sc, sc)
    return {
        "w_ih": u(ks[0], (4 * hidden, hidden), s),
        "w_hh": u(ks[1], (4 * hidden, hidden), s),
        "b_ih": u(ks[2], (4 * hidden,), s),
        "b_hh": u(ks[3], (4 * hidden,), s),
        "w1":   u(ks[4], (fc1_out, hidden), s),
        "b1":   u(ks[5], (fc1_out,), s),
        "w2":   u(ks[6], (fc2_out, fc1_out), 1.0 / jnp.sqrt(fc1_out)),
        "b2":   u(ks[7], (fc2_out,), 1.0 / jnp.sqrt(fc1_out)),
    }


if __name__ == "__main__":
    B, S, H = 2, 8, 32          # batch, seq, lstm_hidden
    FC1, FC2 = 32, 16           # fc1_output, fc2_output

    key = jax.random.PRNGKey(0)
    k_x, k_p = jax.random.split(key)
    enc_output = jax.random.normal(k_x, (B, S, H), jnp.float32)
    params = _init_params(k_p, H, FC1, FC2)

    packed = pack_params(params)     # once, at parameter-load time

    out = post_encoder_forward(enc_output, packed["w"], packed["b"],
                               fc1=FC1, fc2=FC2)
    out = jax.block_until_ready(out)

    ref = _reference_forward(enc_output, params)
    assert out.shape == (1, B, FC2), out.shape
    # bf16 MXU operands -> loosened tolerance vs the pure-f32 reference.
    max_err = float(jnp.max(jnp.abs(out - ref)))
    assert jnp.allclose(out, ref, atol=5e-2, rtol=5e-2), f"mismatch, max_err={max_err}"
    print("KERNEL_OK")
</pallas_src>

<mosaic_0001>
module attributes {stable_mosaic.version = 11 : i64} {
  func.func @_post_encoder_kernel(%arg0: memref<64x32xbf16, #tpu.memory_space<vmem>>, %arg1: memref<4x32x128xbf16, #tpu.memory_space<vmem>>, %arg2: memref<3x1x128xf32, #tpu.memory_space<vmem>>, %arg3: memref<8x16xf32, #tpu.memory_space<vmem>>) attributes {dimension_semantics = [], scalar_prefetch = 0 : i64, scratch_operands = 0 : i64, tpu.core_type = #tpu.core_type<tc>} {
    %c0 = arith.constant 0 : index
    %c0_0 = arith.constant 0 : index
    %c0_1 = arith.constant 0 : index
    %0 = vector.load %arg1[%c0, %c0_0, %c0_1] : memref<4x32x128xbf16, #tpu.memory_space<vmem>>, vector<1x32x128xbf16>
    %1 = vector.shape_cast %0 : vector<1x32x128xbf16> to vector<32x128xbf16>
    %c1 = arith.constant 1 : index
    %c0_2 = arith.constant 0 : index
    %c0_3 = arith.constant 0 : index
    %2 = vector.load %arg1[%c1, %c0_2, %c0_3] : memref<4x32x128xbf16, #tpu.memory_space<vmem>>, vector<1x32x128xbf16>
    %3 = vector.shape_cast %2 : vector<1x32x128xbf16> to vector<32x128xbf16>
    %c2 = arith.constant 2 : index
    %c0_4 = arith.constant 0 : index
    %c0_5 = arith.constant 0 : index
    %4 = vector.load %arg1[%c2, %c0_4, %c0_5] : memref<4x32x128xbf16, #tpu.memory_space<vmem>>, vector<1x32x128xbf16>
    %5 = vector.shape_cast %4 : vector<1x32x128xbf16> to vector<32x128xbf16>
    %6 = vector.extract_strided_slice %5 {offsets = [0, 0], sizes = [32, 32], strides = [1, 1]} : vector<32x128xbf16> to vector<32x32xbf16>
    %c3 = arith.constant 3 : index
    %c0_6 = arith.constant 0 : index
    %c0_7 = arith.constant 0 : index
    %7 = vector.load %arg1[%c3, %c0_6, %c0_7] : memref<4x32x128xbf16, #tpu.memory_space<vmem>>, vector<1x32x128xbf16>
    %8 = vector.shape_cast %7 : vector<1x32x128xbf16> to vector<32x128xbf16>
    %9 = vector.extract_strided_slice %8 {offsets = [0, 0], sizes = [32, 16], strides = [1, 1]} : vector<32x128xbf16> to vector<32x16xbf16>
    %c0_8 = arith.constant 0 : index
    %c0_9 = arith.constant 0 : index
    %c0_10 = arith.constant 0 : index
    %10 = vector.load %arg2[%c0_8, %c0_9, %c0_10] : memref<3x1x128xf32, #tpu.memory_space<vmem>>, vector<1x1x128xf32>
    %11 = vector.shape_cast %10 : vector<1x1x128xf32> to vector<1x128xf32>
    %c1_11 = arith.constant 1 : index
    %c0_12 = arith.constant 0 : index
    %c0_13 = arith.constant 0 : index
    %12 = vector.load %arg2[%c1_11, %c0_12, %c0_13] : memref<3x1x128xf32, #tpu.memory_space<vmem>>, vector<1x1x128xf32>
    %13 = vector.shape_cast %12 : vector<1x1x128xf32> to vector<1x128xf32>
    %14 = vector.extract_strided_slice %13 {offsets = [0, 0], sizes = [1, 32], strides = [1, 1]} : vector<1x128xf32> to vector<1x32xf32>
    %c2_14 = arith.constant 2 : index
    %c0_15 = arith.constant 0 : index
    %c0_16 = arith.constant 0 : index
    %15 = vector.load %arg2[%c2_14, %c0_15, %c0_16] : memref<3x1x128xf32, #tpu.memory_space<vmem>>, vector<1x1x128xf32>
    %16 = vector.shape_cast %15 : vector<1x1x128xf32> to vector<1x128xf32>
    %17 = vector.extract_strided_slice %16 {offsets = [0, 0], sizes = [1, 16], strides = [1, 1]} : vector<1x128xf32> to vector<1x16xf32>
    %c0_17 = arith.constant 0 : index
    %c0_18 = arith.constant 0 : index
    %18 = vector.load %arg0[%c0_17, %c0_18] : memref<64x32xbf16, #tpu.memory_space<vmem>>, vector<64x32xbf16>
    %cst = arith.constant dense<0.000000e+00> : vector<64x128xf32>
    %19 = tpu.matmul %18, %1, %cst {dimension_numbers = #tpu.dot_dimension_numbers<[1], [0], [0], [1], [0, 0, 1, 1], [], []>} : vector<64x32xbf16>, vector<32x128xbf16>, vector<64x128xf32> -> vector<64x128xf32>
    %20 = vector.broadcast %11 : vector<1x128xf32> to vector<64x128xf32>
    %21 = arith.addf %19, %20 : vector<64x128xf32>
    %22 = vector.shape_cast %21 : vector<64x128xf32> to vector<8x8x128xf32>
    %23 = tpu.iota {dimensions = array<i32: 1>} : vector<8x128xi32>
    %c64_i32 = arith.constant 64 : i32
    %24 = vector.broadcast %c64_i32 : i32 to vector<8x128xi32>
    %25 = arith.cmpi sge, %23, %24 : vector<8x128xi32>
    %c96_i32 = arith.constant 96 : i32
    %26 = vector.broadcast %c96_i32 : i32 to vector<8x128xi32>
    %27 = arith.cmpi slt, %23, %26 : vector<8x128xi32>
    %28 = arith.andi %25, %27 : vector<8x128xi1>
    %cst_19 = arith.constant 0.000000e+00 : f32
    %29 = vector.broadcast %cst_19 : f32 to vector<8x32xf32>
    %cst_20 = arith.constant 0.000000e+00 : f32
    %30 = vector.broadcast %cst_20 : f32 to vector<8x32xf32>
    %31 = vector.extract_strided_slice %22 {offsets = [0, 0, 0], sizes = [1, 8, 128], strides = [1, 1, 1]} : vector<8x8x128xf32> to vector<1x8x128xf32>
    %32 = vector.shape_cast %31 : vector<1x8x128xf32> to vector<8x128xf32>
    %33 = arith.truncf %29 : vector<8x32xf32> to vector<8x32xbf16>
    %cst_21 = arith.constant dense<0.000000e+00> : vector<8x128xf32>
    %34 = tpu.matmul %33, %3, %cst_21 {dimension_numbers = #tpu.dot_dimension_numbers<[1], [0], [0], [1], [0, 0, 1, 1], [], []>} : vector<8x32xbf16>, vector<32x128xbf16>, vector<8x128xf32> -> vector<8x128xf32>
    %35 = arith.addf %32, %34 : vector<8x128xf32>
    %36 = math.tanh %35 : vector<8x128xf32>
    %cst_22 = arith.constant 1.000000e+00 : f32
    %37 = vector.broadcast %cst_22 : f32 to vector<8x128xf32>
    %38 = arith.addf %36, %37 : vector<8x128xf32>
    %cst_23 = arith.constant 5.000000e-01 : f32
    %39 = vector.broadcast %cst_23 : f32 to vector<8x128xf32>
    %40 = arith.mulf %39, %38 : vector<8x128xf32>
    %41 = arith.select %28, %36, %40 : vector<8x128xi1>, vector<8x128xf32>
    %42 = vector.extract_strided_slice %41 {offsets = [0, 0], sizes = [8, 32], strides = [1, 1]} : vector<8x128xf32> to vector<8x32xf32>
    %43 = vector.extract_strided_slice %41 {offsets = [0, 32], sizes = [8, 32], strides = [1, 1]} : vector<8x128xf32> to vector<8x32xf32>
    %44 = vector.extract_strided_slice %41 {offsets = [0, 64], sizes = [8, 32], strides = [1, 1]} : vector<8x128xf32> to vector<8x32xf32>
    %45 = vector.extract_strided_slice %41 {offsets = [0, 96], sizes = [8, 32], strides = [1, 1]} : vector<8x128xf32> to vector<8x32xf32>
    %46 = arith.mulf %43, %30 : vector<8x32xf32>
    %47 = arith.mulf %42, %44 : vector<8x32xf32>
    %48 = arith.addf %46, %47 : vector<8x32xf32>
    %49 = math.tanh %48 : vector<8x32xf32>
    %50 = arith.mulf %45, %49 : vector<8x32xf32>
    %51 = vector.extract_strided_slice %22 {offsets = [1, 0, 0], sizes = [1, 8, 128], strides = [1, 1, 1]} : vector<8x8x128xf32> to vector<1x8x128xf32>
    %52 = vector.shape_cast %51 : vector<1x8x128xf32> to vector<8x128xf32>
    %53 = arith.truncf %50 : vector<8x32xf32> to vector<8x32xbf16>
    %cst_24 = arith.constant dense<0.000000e+00> : vector<8x128xf32>
    %54 = tpu.matmul %53, %3, %cst_24 {dimension_numbers = #tpu.dot_dimension_numbers<[1], [0], [0], [1], [0, 0, 1, 1], [], []>} : vector<8x32xbf16>, vector<32x128xbf16>, vector<8x128xf32> -> vector<8x128xf32>
    %55 = arith.addf %52, %54 : vector<8x128xf32>
    %56 = math.tanh %55 : vector<8x128xf32>
    %cst_25 = arith.constant 1.000000e+00 : f32
    %57 = vector.broadcast %cst_25 : f32 to vector<8x128xf32>
    %58 = arith.addf %56, %57 : vector<8x128xf32>
    %cst_26 = arith.constant 5.000000e-01 : f32
    %59 = vector.broadcast %cst_26 : f32 to vector<8x128xf32>
    %60 = arith.mulf %59, %58 : vector<8x128xf32>
    %61 = arith.select %28, %56, %60 : vector<8x128xi1>, vector<8x128xf32>
    %62 = vector.extract_strided_slice %61 {offsets = [0, 0], sizes = [8, 32], strides = [1, 1]} : vector<8x128xf32> to vector<8x32xf32>
    %63 = vector.extract_strided_slice %61 {offsets = [0, 32], sizes = [8, 32], strides = [1, 1]} : vector<8x128xf32> to vector<8x32xf32>
    %64 = vector.extract_strided_slice %61 {offsets = [0, 64], sizes = [8, 32], strides = [1, 1]} : vector<8x128xf32> to vector<8x32xf32>
    %65 = vector.extract_strided_slice %61 {offsets = [0, 96], sizes = [8, 32], strides = [1, 1]} : vector<8x128xf32> to vector<8x32xf32>
    %66 = arith.mulf %63, %48 : vector<8x32xf32>
    %67 = arith.mulf %62, %64 : vector<8x32xf32>
    %68 = arith.addf %66, %67 : vector<8x32xf32>
    %69 = math.tanh %68 : vector<8x32xf32>
    %70 = arith.mulf %65, %69 : vector<8x32xf32>
    %71 = vector.extract_strided_slice %22 {offsets = [2, 0, 0], sizes = [1, 8, 128], strides = [1, 1, 1]} : vector<8x8x128xf32> to vector<1x8x128xf32>
    %72 = vector.shape_cast %71 : vector<1x8x128xf32> to vector<8x128xf32>
    %73 = arith.truncf %70 : vector<8x32xf32> to vector<8x32xbf16>
    %cst_27 = arith.constant dense<0.000000e+00> : vector<8x128xf32>
    %74 = tpu.matmul %73, %3, %cst_27 {dimension_numbers = #tpu.dot_dimension_numbers<[1], [0], [0], [1], [0, 0, 1, 1], [], []>} : vector<8x32xbf16>, vector<32x128xbf16>, vector<8x128xf32> -> vector<8x128xf32>
    %75 = arith.addf %72, %74 : vector<8x128xf32>
    %76 = math.tanh %75 : vector<8x128xf32>
    %cst_28 = arith.constant 1.000000e+00 : f32
    %77 = vector.broadcast %cst_28 : f32 to vector<8x128xf32>
    %78 = arith.addf %76, %77 : vector<8x128xf32>
    %cst_29 = arith.constant 5.000000e-01 : f32
    %79 = vector.broadcast %cst_29 : f32 to vector<8x128xf32>
    %80 = arith.mulf %79, %78 : vector<8x128xf32>
    %81 = arith.select %28, %76, %80 : vector<8x128xi1>, vector<8x128xf32>
    %82 = vector.extract_strided_slice %81 {offsets = [0, 0], sizes = [8, 32], strides = [1, 1]} : vector<8x128xf32> to vector<8x32xf32>
    %83 = vector.extract_strided_slice %81 {offsets = [0, 32], sizes = [8, 32], strides = [1, 1]} : vector<8x128xf32> to vector<8x32xf32>
    %84 = vector.extract_strided_slice %81 {offsets = [0, 64], sizes = [8, 32], strides = [1, 1]} : vector<8x128xf32> to vector<8x32xf32>
    %85 = vector.extract_strided_slice %81 {offsets = [0, 96], sizes = [8, 32], strides = [1, 1]} : vector<8x128xf32> to vector<8x32xf32>
    %86 = arith.mulf %83, %68 : vector<8x32xf32>
    %87 = arith.mulf %82, %84 : vector<8x32xf32>
    %88 = arith.addf %86, %87 : vector<8x32xf32>
    %89 = math.tanh %88 : vector<8x32xf32>
    %90 = arith.mulf %85, %89 : vector<8x32xf32>
    %91 = vector.extract_strided_slice %22 {offsets = [3, 0, 0], sizes = [1, 8, 128], strides = [1, 1, 1]} : vector<8x8x128xf32> to vector<1x8x128xf32>
    %92 = vector.shape_cast %91 : vector<1x8x128xf32> to vector<8x128xf32>
    %93 = arith.truncf %90 : vector<8x32xf32> to vector<8x32xbf16>
    %cst_30 = arith.constant dense<0.000000e+00> : vector<8x128xf32>
    %94 = tpu.matmul %93, %3, %cst_30 {dimension_numbers = #tpu.dot_dimension_numbers<[1], [0], [0], [1], [0, 0, 1, 1], [], []>} : vector<8x32xbf16>, vector<32x128xbf16>, vector<8x128xf32> -> vector<8x128xf32>
    %95 = arith.addf %92, %94 : vector<8x128xf32>
    %96 = math.tanh %95 : vector<8x128xf32>
    %cst_31 = arith.constant 1.000000e+00 : f32
    %97 = vector.broadcast %cst_31 : f32 to vector<8x128xf32>
    %98 = arith.addf %96, %97 : vector<8x128xf32>
    %cst_32 = arith.constant 5.000000e-01 : f32
    %99 = vector.broadcast %cst_32 : f32 to vector<8x128xf32>
    %100 = arith.mulf %99, %98 : vector<8x128xf32>
    %101 = arith.select %28, %96, %100 : vector<8x128xi1>, vector<8x128xf32>
    %102 = vector.extract_strided_slice %101 {offsets = [0, 0], sizes = [8, 32], strides = [1, 1]} : vector<8x128xf32> to vector<8x32xf32>
    %103 = vector.extract_strided_slice %101 {offsets = [0, 32], sizes = [8, 32], strides = [1, 1]} : vector<8x128xf32> to vector<8x32xf32>
    %104 = vector.extract_strided_slice %101 {offsets = [0, 64], sizes = [8, 32], strides = [1, 1]} : vector<8x128xf32> to vector<8x32xf32>
    %105 = vector.extract_strided_slice %101 {offsets = [0, 96], sizes = [8, 32], strides = [1, 1]} : vector<8x128xf32> to vector<8x32xf32>
    %106 = arith.mulf %103, %88 : vector<8x32xf32>
    %107 = arith.mulf %102, %104 : vector<8x32xf32>
    %108 = arith.addf %106, %107 : vector<8x32xf32>
    %109 = math.tanh %108 : vector<8x32xf32>
    %110 = arith.mulf %105, %109 : vector<8x32xf32>
    %111 = vector.extract_strided_slice %22 {offsets = [4, 0, 0], sizes = [1, 8, 128], strides = [1, 1, 1]} : vector<8x8x128xf32> to vector<1x8x128xf32>
    %112 = vector.shape_cast %111 : vector<1x8x128xf32> to vector<8x128xf32>
    %113 = arith.truncf %110 : vector<8x32xf32> to vector<8x32xbf16>
    %cst_33 = arith.constant dense<0.000000e+00> : vector<8x128xf32>
    %114 = tpu.matmul %113, %3, %cst_33 {dimension_numbers = #tpu.dot_dimension_numbers<[1], [0], [0], [1], [0, 0, 1, 1], [], []>} : vector<8x32xbf16>, vector<32x128xbf16>, vector<8x128xf32> -> vector<8x128xf32>
    %115 = arith.addf %112, %114 : vector<8x128xf32>
    %116 = math.tanh %115 : vector<8x128xf32>
    %cst_34 = arith.constant 1.000000e+00 : f32
    %117 = vector.broadcast %cst_34 : f32 to vector<8x128xf32>
    %118 = arith.addf %116, %117 : vector<8x128xf32>
    %cst_35 = arith.constant 5.000000e-01 : f32
    %119 = vector.broadcast %cst_35 : f32 to vector<8x128xf32>
    %120 = arith.mulf %119, %118 : vector<8x128xf32>
    %121 = arith.select %28, %116, %120 : vector<8x128xi1>, vector<8x128xf32>
    %122 = vector.extract_strided_slice %121 {offsets = [0, 0], sizes = [8, 32], strides = [1, 1]} : vector<8x128xf32> to vector<8x32xf32>
    %123 = vector.extract_strided_slice %121 {offsets = [0, 32], sizes = [8, 32], strides = [1, 1]} : vector<8x128xf32> to vector<8x32xf32>
    %124 = vector.extract_strided_slice %121 {offsets = [0, 64], sizes = [8, 32], strides = [1, 1]} : vector<8x128xf32> to vector<8x32xf32>
    %125 = vector.extract_strided_slice %121 {offsets = [0, 96], sizes = [8, 32], strides = [1, 1]} : vector<8x128xf32> to vector<8x32xf32>
    %126 = arith.mulf %123, %108 : vector<8x32xf32>
    %127 = arith.mulf %122, %124 : vector<8x32xf32>
    %128 = arith.addf %126, %127 : vector<8x32xf32>
    %129 = math.tanh %128 : vector<8x32xf32>
    %130 = arith.mulf %125, %129 : vector<8x32xf32>
    %131 = vector.extract_strided_slice %22 {offsets = [5, 0, 0], sizes = [1, 8, 128], strides = [1, 1, 1]} : vector<8x8x128xf32> to vector<1x8x128xf32>
    %132 = vector.shape_cast %131 : vector<1x8x128xf32> to vector<8x128xf32>
    %133 = arith.truncf %130 : vector<8x32xf32> to vector<8x32xbf16>
    %cst_36 = arith.constant dense<0.000000e+00> : vector<8x128xf32>
    %134 = tpu.matmul %133, %3, %cst_36 {dimension_numbers = #tpu.dot_dimension_numbers<[1], [0], [0], [1], [0, 0, 1, 1], [], []>} : vector<8x32xbf16>, vector<32x128xbf16>, vector<8x128xf32> -> vector<8x128xf32>
    %135 = arith.addf %132, %134 : vector<8x128xf32>
    %136 = math.tanh %135 : vector<8x128xf32>
    %cst_37 = arith.constant 1.000000e+00 : f32
    %137 = vector.broadcast %cst_37 : f32 to vector<8x128xf32>
    %138 = arith.addf %136, %137 : vector<8x128xf32>
    %cst_38 = arith.constant 5.000000e-01 : f32
    %139 = vector.broadcast %cst_38 : f32 to vector<8x128xf32>
    %140 = arith.mulf %139, %138 : vector<8x128xf32>
    %141 = arith.select %28, %136, %140 : vector<8x128xi1>, vector<8x128xf32>
    %142 = vector.extract_strided_slice %141 {offsets = [0, 0], sizes = [8, 32], strides = [1, 1]} : vector<8x128xf32> to vector<8x32xf32>
    %143 = vector.extract_strided_slice %141 {offsets = [0, 32], sizes = [8, 32], strides = [1, 1]} : vector<8x128xf32> to vector<8x32xf32>
    %144 = vector.extract_strided_slice %141 {offsets = [0, 64], sizes = [8, 32], strides = [1, 1]} : vector<8x128xf32> to vector<8x32xf32>
    %145 = vector.extract_strided_slice %141 {offsets = [0, 96], sizes = [8, 32], strides = [1, 1]} : vector<8x128xf32> to vector<8x32xf32>
    %146 = arith.mulf %143, %128 : vector<8x32xf32>
    %147 = arith.mulf %142, %144 : vector<8x32xf32>
    %148 = arith.addf %146, %147 : vector<8x32xf32>
    %149 = math.tanh %148 : vector<8x32xf32>
    %150 = arith.mulf %145, %149 : vector<8x32xf32>
    %151 = vector.extract_strided_slice %22 {offsets = [6, 0, 0], sizes = [1, 8, 128], strides = [1, 1, 1]} : vector<8x8x128xf32> to vector<1x8x128xf32>
    %152 = vector.shape_cast %151 : vector<1x8x128xf32> to vector<8x128xf32>
    %153 = arith.truncf %150 : vector<8x32xf32> to vector<8x32xbf16>
    %cst_39 = arith.constant dense<0.000000e+00> : vector<8x128xf32>
    %154 = tpu.matmul %153, %3, %cst_39 {dimension_numbers = #tpu.dot_dimension_numbers<[1], [0], [0], [1], [0, 0, 1, 1], [], []>} : vector<8x32xbf16>, vector<32x128xbf16>, vector<8x128xf32> -> vector<8x128xf32>
    %155 = arith.addf %152, %154 : vector<8x128xf32>
    %156 = math.tanh %155 : vector<8x128xf32>
    %cst_40 = arith.constant 1.000000e+00 : f32
    %157 = vector.broadcast %cst_40 : f32 to vector<8x128xf32>
    %158 = arith.addf %156, %157 : vector<8x128xf32>
    %cst_41 = arith.constant 5.000000e-01 : f32
    %159 = vector.broadcast %cst_41 : f32 to vector<8x128xf32>
    %160 = arith.mulf %159, %158 : vector<8x128xf32>
    %161 = arith.select %28, %156, %160 : vector<8x128xi1>, vector<8x128xf32>
    %162 = vector.extract_strided_slice %161 {offsets = [0, 0], sizes = [8, 32], strides = [1, 1]} : vector<8x128xf32> to vector<8x32xf32>
    %163 = vector.extract_strided_slice %161 {offsets = [0, 32], sizes = [8, 32], strides = [1, 1]} : vector<8x128xf32> to vector<8x32xf32>
    %164 = vector.extract_strided_slice %161 {offsets = [0, 64], sizes = [8, 32], strides = [1, 1]} : vector<8x128xf32> to vector<8x32xf32>
    %165 = vector.extract_strided_slice %161 {offsets = [0, 96], sizes = [8, 32], strides = [1, 1]} : vector<8x128xf32> to vector<8x32xf32>
    %166 = arith.mulf %163, %148 : vector<8x32xf32>
    %167 = arith.mulf %162, %164 : vector<8x32xf32>
    %168 = arith.addf %166, %167 : vector<8x32xf32>
    %169 = math.tanh %168 : vector<8x32xf32>
    %170 = arith.mulf %165, %169 : vector<8x32xf32>
    %171 = vector.extract_strided_slice %22 {offsets = [7, 0, 0], sizes = [1, 8, 128], strides = [1, 1, 1]} : vector<8x8x128xf32> to vector<1x8x128xf32>
    %172 = vector.shape_cast %171 : vector<1x8x128xf32> to vector<8x128xf32>
    %173 = arith.truncf %170 : vector<8x32xf32> to vector<8x32xbf16>
    %cst_42 = arith.constant dense<0.000000e+00> : vector<8x128xf32>
    %174 = tpu.matmul %173, %3, %cst_42 {dimension_numbers = #tpu.dot_dimension_numbers<[1], [0], [0], [1], [0, 0, 1, 1], [], []>} : vector<8x32xbf16>, vector<32x128xbf16>, vector<8x128xf32> -> vector<8x128xf32>
    %175 = arith.addf %172, %174 : vector<8x128xf32>
    %176 = math.tanh %175 : vector<8x128xf32>
    %cst_43 = arith.constant 1.000000e+00 : f32
    %177 = vector.broadcast %cst_43 : f32 to vector<8x128xf32>
    %178 = arith.addf %176, %177 : vector<8x128xf32>
    %cst_44 = arith.constant 5.000000e-01 : f32
    %179 = vector.broadcast %cst_44 : f32 to vector<8x128xf32>
    %180 = arith.mulf %179, %178 : vector<8x128xf32>
    %181 = arith.select %28, %176, %180 : vector<8x128xi1>, vector<8x128xf32>
    %182 = vector.extract_strided_slice %181 {offsets = [0, 0], sizes = [8, 32], strides = [1, 1]} : vector<8x128xf32> to vector<8x32xf32>
    %183 = vector.extract_strided_slice %181 {offsets = [0, 32], sizes = [8, 32], strides = [1, 1]} : vector<8x128xf32> to vector<8x32xf32>
    %184 = vector.extract_strided_slice %181 {offsets = [0, 64], sizes = [8, 32], strides = [1, 1]} : vector<8x128xf32> to vector<8x32xf32>
    %185 = vector.extract_strided_slice %181 {offsets = [0, 96], sizes = [8, 32], strides = [1, 1]} : vector<8x128xf32> to vector<8x32xf32>
    %186 = arith.mulf %183, %168 : vector<8x32xf32>
    %187 = arith.mulf %182, %184 : vector<8x32xf32>
    %188 = arith.addf %186, %187 : vector<8x32xf32>
    %189 = math.tanh %188 : vector<8x32xf32>
    %190 = arith.mulf %185, %189 : vector<8x32xf32>
    %191 = arith.truncf %190 : vector<8x32xf32> to vector<8x32xbf16>
    %cst_45 = arith.constant dense<0.000000e+00> : vector<8x32xf32>
    %192 = tpu.matmul %191, %6, %cst_45 {dimension_numbers = #tpu.dot_dimension_numbers<[1], [0], [0], [1], [0, 0, 1, 1], [], []>} : vector<8x32xbf16>, vector<32x32xbf16>, vector<8x32xf32> -> vector<8x32xf32>
    %193 = vector.broadcast %14 : vector<1x32xf32> to vector<8x32xf32>
    %194 = arith.addf %192, %193 : vector<8x32xf32>
    %cst_46 = arith.constant 0.000000e+00 : f32
    %195 = vector.broadcast %cst_46 : f32 to vector<8x32xf32>
    %196 = arith.maximumf %194, %195 : vector<8x32xf32>
    %197 = arith.truncf %196 : vector<8x32xf32> to vector<8x32xbf16>
    %cst_47 = arith.constant dense<0.000000e+00> : vector<8x16xf32>
    %198 = tpu.matmul %197, %9, %cst_47 {dimension_numbers = #tpu.dot_dimension_numbers<[1], [0], [0], [1], [0, 0, 1, 1], [], []>} : vector<8x32xbf16>, vector<32x16xbf16>, vector<8x16xf32> -> vector<8x16xf32>
    %199 = vector.broadcast %17 : vector<1x16xf32> to vector<8x16xf32>
    %200 = arith.addf %198, %199 : vector<8x16xf32>
    %c0_48 = arith.constant 0 : index
    %c0_49 = arith.constant 0 : index
    %201 = vector.load %arg3[%c0_48, %c0_49] : memref<8x16xf32, #tpu.memory_space<vmem>>, vector<8x16xf32>
    tpu.vector_store %arg3[%c0_48, %c0_49], %200 {strides = array<i32>} : memref<8x16xf32, #tpu.memory_space<vmem>>, vector<8x16xf32>,
    return
  }
}

</mosaic_0001>

<bundles_post_ra>
// kernel: post_encoder_forward.1
= control target key start
LH: loop header
LB: loop body
LE: loop exit
PB: predicated region body
PF: predicated region fallthrough
CT: control target
= control target key end

     0   :  { %v1081_v1 = vmov 0.0   ;;  %vm1082_vm0 = vmmov 0   ;;  %vm85_vm1 = vcmask 261120   ;;  %v1083_v7 = vmov 0   ;;  %s1084_s26 = smov 64   ;;  %s1085_s27 = smov 32   ;;  %s1307_s1 = inlined_call_operand.vmem [shape: bf16[4,32,128], index: 1, kind: input, shape index: {}]   ;;  %s1308_s0 = inlined_call_operand.vmem [shape: bf16[64,32], index: 0, kind: input, shape index: {}]   ;;  %s1309_s2 = inlined_call_operand.vmem [shape: f32[3,1,128], index: 2, kind: input, shape index: {}]   ;;  %s1310_s3 = inlined_call_operand.vmem [shape: f32[8,16], index: 3, kind: output, shape index: {}]  }
   0x1   :  { %v1037_v0 = vld [vmem:[%s1307_s1] sm:$0xff]   ;;  %952 = vmatprep.subr.bf16.mxu1 %v1081_v1  ;;  %956 = vmatprep.mubr.msk.bf16.mxu1 %vm1082_vm0, %v1081_v1  ;;  %v1115_v2 = vld [vmem:[%s1307_s1 + $0x10] sm:$0xff]   ;;  %v1039_v3 = vld [vmem:[%s1307_s1 + $0x8] sm:$0xff]   ;;  %v163_v19 = vlaneseq  ;;  %vm856_vm5 = vcmask 130048  }
   0x2   :  { %940 = vmatprep.subr.bf16.mxu0 %v1037_v0  ;;  %953 = vmatpush3.bf16.msra.mxu1 %v1115_v2  ;;  %v1124_v4 = vld [vmem:[%s1307_s1 + $0x18] sm:$0xff]   ;;  %v1041_v5 = vld [vmem:[%s1308_s0] sm:$0xff]   ;;  %v1042_v6 = vld [vmem:[%s1308_s0 + $0x8] sm:$0xff]  }
   0x3   :  { %941 = vmatpush3.bf16.msra.mxu0 %v1037_v0  ;;  %954 = vmatprep.subr.bf16.mxu1 %v1081_v1  ;;  %v1151_v8 = vld [vmem:[%s1309_s2] ss:$0 sm:$0xff]  ;;  %v164_v20 = vand.u32 127, %v163_v19  ;;  %v1043_v51 = vld [vmem:[%s1308_s0 + $0x10] sm:$0xff]   ;;  %v1044_v52 = vld [vmem:[%s1308_s0 + $0x18] sm:$0xff]  }
   0x4   :  { %942 = vmatprep.subr.bf16.mxu0 %v1039_v3  ;;  %944 = vmatprep.mubr.msk.bf16.mxu0 %vm85_vm1, %v1041_v5  ;;  %v1046_v23 = vld [vmem:[%s1307_s1 + $0x28] sm:$0xff]  }
   0x5   :  { %vm165_vm2 = vcmp.ge.s32.totalorder %v164_v20, 64  ;;  %vm166_vm3 = vcmp.lt.s32.totalorder %v164_v20, 96 }
   0x6   :  { %955 = vmatpush3.bf16.msra.mxu1 %v1124_v4  ;;  %vm1158_vm4 = vmand %vm165_vm2, %vm166_vm3 }
   0x7   :  { %943 = vmatpush3.bf16.msra.mxu0 %v1039_v3  ;;  %960 = vmatprep.subr.bf16.mxu1 %v1081_v1 }
   0x8   :  { %968 = vmatprep.subr.bf16.mxu0 %v1081_v1 }
   0x9   :  { %957 = vmatmul.mubr.bf16.vlgmr.msra.gmra.mrb[0].mxu1 %v1083_v7 }
   0xa   :  { %945 = vmatmul.mubr.msk.bf16.vlgmr.msra.gmra.mrb[0].mxu0 %vm85_vm1, %v1042_v6  ;;  %961 = vmatpush3.bf16.msra.mxu1 %v1115_v2 }
   0xb   :  { %964 = vmatprep.mubr.msk.bf16.mxu1 %vm1082_vm0, %v1081_v1  ;;  %962 = vmatprep.subr.bf16.mxu1 %v1081_v1 }
   0xc   :  { %969 = vmatpush3.bf16.msra.mxu0 %v1115_v2  ;;  %948 = vmatprep.mubr.msk.bf16.mxu0 %vm85_vm1, %v1043_v51 }
   0xd   :  { %970 = vmatprep.subr.bf16.mxu0 %v1081_v1 }
   0xe   :  { %963 = vmatpush3.bf16.msra.mxu1 %v1124_v4 }
   0xf   :  { %976 = vmatprep.subr.bf16.mxu1 %v1081_v1 }
  0x10   :  { %971 = vmatpush3.bf16.msra.mxu0 %v1124_v4 }
  0x11   :  { %984 = vmatprep.subr.bf16.mxu0 %v1081_v1 }
  0x12   :  { %949 = vmatmul.mubr.msk.bf16.gmra.mrb[4].mxu0 %vm85_vm1, %v1044_v52 }
  0x13   :  { %972 = vmatprep.mubr.msk.bf16.mxu0 %vm1082_vm0, %v1081_v1 }
  0xdc   :  { %v217_v10 = vpop.f32.mrb[0].mxu1 }
  0xdd   :  { %v1153_v9 = vpop.f32.mrb[0].mxu0  ;;  %v958_v12 = vpop.f32.mrb[1].mxu1 }
  0xde   :  { %v132_v11 = vpop.f32.mrb[1].mxu0  ;;  %v220_v15 = vpop.f32.mrb[2].mxu1  ;;  %v141_v62 = vadd.f32 %v1153_v9, %v1151_v8 }
  0xdf   :  { %v133_v13 = vadd.f32 %v1151_v8, %v132_v11  ;;  %v1156_v14 = vpop.f32.mrb[2].mxu0  ;;  %v959_v17 = vpop.f32.mrb[3].mxu1 }
  0xe0   :  { %v135_v16 = vpop.f32.mrb[3].mxu0 }
  0xe1   :  { %v223_v18 = vadd.f32 %v217_v10, %v133_v13  ;;  %v136_v36 = vadd.f32 %v1151_v8, %v135_v16 }
  0xe3   :  { %1049 = vtanh.f32 %v223_v18 }
  0xe5   :  { %v1192_v57 = vpop.f32.mrb[4].mxu0 }
  0xe6   :  { %v1194_v58 = vpop.f32.mrb[5].mxu0 }
  0xe7   :  { %v1196_v59 = vpop.f32.mrb[6].mxu0 }
  0xe8   :  { %v1198_v60 = vpop.f32.mrb[7].mxu0 }
  0xed   :  { %v1050_v21 = vpop.eup %1049 }
  0xee   :  { %v225_v22 = vadd.f32 1.0, %v1050_v21 }
  0xf0   :  { %v226_v24 = vmul.f32 0.5, %v225_v22 }
  0xf2   :  { %v227_v25 = vsel %vm1158_vm4, %v1050_v21, %v226_v24  ;;  %v144_v24 = vadd.f32 %v1156_v14, %v1151_v8 }
  0xf3   :  { %230 = vrot.lane.b32.xlu0 %v227_v25, %s1084_s26  ;;  %v228_v28 = vmul.f32 0.0, %v227_v25 }
 0x165   :  { %v231_v26 = vpop.permute.xlu0 %230 }
 0x166   :  { %v233_v27 = vmul.f32 %v231_v26, %v227_v25 }
 0x168   :  { %235 = vrot.lane.b32.xlu0 %v233_v27, %s1085_s27 }
 0x1da   :  { %v236_v29 = vpop.permute.xlu0 %235 }
 0x1db   :  { %v238_v30 = vadd.f32 %v236_v29, %v228_v28 }
 0x1dd   :  { %1051 = vtanh.f32 %v238_v30 }
 0x1e7   :  { %v1052_v31 = vpop.eup %1051 }
 0x1e8   :  { %241 = vrot.lane.b32.xlu1 %v1052_v31, %s1084_s26 }
 0x25a   :  { %v242_v32 = vpop.permute.xlu1 %241 }
 0x25b   :  { %v244_v33 = vmul.f32 %v242_v32, %v227_v25 }
 0x25d   :  { %v245_v34 = vpack.c.bf16 %v244_v33, %v244_v33 }
 0x25f   :  { %247 = vrot.lane.b32.xlu1 %v245_v34, %s1085_s27 }
 0x2d1   :  { %v248_v35 = vpop.permute.xlu1 %247 }
 0x2d2   :  { %965 = vmatmul.mubr.msk.bf16.vlgmr.msra.gmra.mrb[4].mxu1 %vm85_vm1, %v248_v35 }
 0x2d3   :  { %977 = vmatpush3.bf16.msra.mxu1 %v1115_v2  ;;  %980 = vmatprep.mubr.msk.bf16.mxu1 %vm1082_vm0, %v1081_v1 }
 0x2d4   :  { %978 = vmatprep.subr.bf16.mxu1 %v1081_v1 }
 0x2d7   :  { %979 = vmatpush3.bf16.msra.mxu1 %v1124_v4 }
 0x2d8   :  { %992 = vmatprep.subr.bf16.mxu1 %v1081_v1 }
 0x3a5   :  { %v286_v37 = vpop.f32.mrb[4].mxu1 }
 0x3a6   :  { %v292_v38 = vadd.f32 %v286_v37, %v136_v36  ;;  %v966_v39 = vpop.f32.mrb[5].mxu1 }
 0x3a7   :  { %v289_v40 = vpop.f32.mrb[6].mxu1 }
 0x3a8   :  { %1053 = vtanh.f32 %v292_v38  ;;  %v967_v41 = vpop.f32.mrb[7].mxu1 }
 0x3b2   :  { %v1054_v42 = vpop.eup %1053 }
 0x3b3   :  { %v294_v43 = vadd.f32 1.0, %v1054_v42 }
 0x3b5   :  { %v295_v44 = vmul.f32 0.5, %v294_v43  ;;  %v149_v43 = vadd.f32 %v1151_v8, %v1194_v58 }
 0x3b7   :  { %v296_v45 = vsel %vm1158_vm4, %v1054_v42, %v295_v44 }
 0x3b8   :  { %299 = vrot.lane.b32.xlu0 %v296_v45, %s1084_s26  ;;  %v297_v48 = vmul.f32 %v296_v45, %v238_v30 }
 0x42a   :  { %v300_v46 = vpop.permute.xlu0 %299 }
 0x42b   :  { %v302_v47 = vmul.f32 %v300_v46, %v296_v45 }
 0x42d   :  { %304 = vrot.lane.b32.xlu1 %v302_v47, %s1085_s27 }
 0x49f   :  { %v305_v49 = vpop.permute.xlu1 %304 }
 0x4a0   :  { %v307_v50 = vadd.f32 %v305_v49, %v297_v48 }
 0x4a2   :  { %1055 = vtanh.f32 %v307_v50 }
 0x4ac   :  { %v1056_v53 = vpop.eup %1055 }
 0x4ad   :  { %310 = vrot.lane.b32.xlu0 %v1056_v53, %s1084_s26 }
 0x51f   :  { %v311_v54 = vpop.permute.xlu0 %310 }
 0x520   :  { %v313_v55 = vmul.f32 %v311_v54, %v296_v45 }
 0x522   :  { %v314_v56 = vpack.c.bf16 %v313_v55, %v313_v55 }
 0x524   :  { %316 = vrot.lane.b32.xlu1 %v314_v56, %s1085_s27 }
 0x596   :  { %v317_v61 = vpop.permute.xlu1 %316 }
 0x597   :  { %973 = vmatmul.mubr.msk.bf16.vlgmr.msra.gmra.mrb[8].mxu0 %vm85_vm1, %v317_v61 }
 0x598   :  { %985 = vmatpush3.bf16.msra.mxu0 %v1115_v2  ;;  %988 = vmatprep.mubr.msk.bf16.mxu0 %vm1082_vm0, %v1081_v1 }
 0x599   :  { %986 = vmatprep.subr.bf16.mxu0 %v1081_v1 }
 0x59c   :  { %987 = vmatpush3.bf16.msra.mxu0 %v1124_v4 }
 0x59d   :  { %1000 = vmatprep.subr.bf16.mxu0 %v1081_v1 }
 0x66a   :  { %v355_v63 = vpop.f32.mrb[8].mxu0 }
 0x66b   :  { %v361_v0 = vadd.f32 %v355_v63, %v141_v62  ;;  %v974_v3 = vpop.f32.mrb[9].mxu0 }
 0x66c   :  { %v358_v5 = vpop.f32.mrb[10].mxu0 }
 0x66d   :  { %1057 = vtanh.f32 %v361_v0  ;;  %v975_v6 = vpop.f32.mrb[11].mxu0  ;;  %v152_v5 = vadd.f32 %v1151_v8, %v1198_v60 }
 0x677   :  { %v1058_v7 = vpop.eup %1057 }
 0x678   :  { %v363_v10 = vadd.f32 1.0, %v1058_v7 }
 0x67a   :  { %v364_v11 = vmul.f32 0.5, %v363_v10 }
 0x67c   :  { %v365_v12 = vsel %vm1158_vm4, %v1058_v7, %v364_v11 }
 0x67d   :  { %368 = vrot.lane.b32.xlu0 %v365_v12, %s1084_s26  ;;  %v366_v16 = vmul.f32 %v365_v12, %v307_v50 }
 0x6ef   :  { %v369_v13 = vpop.permute.xlu0 %368 }
 0x6f0   :  { %v371_v15 = vmul.f32 %v369_v13, %v365_v12 }
 0x6f2   :  { %373 = vrot.lane.b32.xlu1 %v371_v15, %s1085_s27 }
 0x764   :  { %v374_v9 = vpop.permute.xlu1 %373 }
 0x765   :  { %v376_v17 = vadd.f32 %v374_v9, %v366_v16 }
 0x767   :  { %1059 = vtanh.f32 %v376_v17 }
 0x771   :  { %v1060_v18 = vpop.eup %1059 }
 0x772   :  { %379 = vrot.lane.b32.xlu0 %v1060_v18, %s1084_s26 }
 0x7e4   :  { %v380_v19 = vpop.permute.xlu0 %379 }
 0x7e5   :  { %v382_v20 = vmul.f32 %v380_v19, %v365_v12 }
 0x7e7   :  { %v383_v21 = vpack.c.bf16 %v382_v20, %v382_v20 }
 0x7e9   :  { %385 = vrot.lane.b32.xlu1 %v383_v21, %s1085_s27 }
 0x85b   :  { %v386_v22 = vpop.permute.xlu1 %385 }
 0x85c   :  { %981 = vmatmul.mubr.msk.bf16.vlgmr.msra.gmra.mrb[8].mxu1 %vm85_vm1, %v386_v22 }
 0x85d   :  { %993 = vmatpush3.bf16.msra.mxu1 %v1115_v2  ;;  %996 = vmatprep.mubr.msk.bf16.mxu1 %vm1082_vm0, %v1081_v1 }
 0x85e   :  { %994 = vmatprep.subr.bf16.mxu1 %v1081_v1 }
 0x861   :  { %995 = vmatpush3.bf16.msra.mxu1 %v1124_v4 }
 0x862   :  { %1008 = vmatprep.subr.bf16.mxu1 %v1081_v1 }
 0x92f   :  { %v424_v25 = vpop.f32.mrb[8].mxu1 }
 0x930   :  { %v430_v26 = vadd.f32 %v424_v25, %v144_v24  ;;  %v982_v27 = vpop.f32.mrb[9].mxu1  ;;  %v157_v25 = vadd.f32 %v1192_v57, %v1151_v8 }
 0x931   :  { %v427_v28 = vpop.f32.mrb[10].mxu1 }
 0x932   :  { %1061 = vtanh.f32 %v430_v26  ;;  %v983_v29 = vpop.f32.mrb[11].mxu1 }
 0x93c   :  { %v1062_v30 = vpop.eup %1061 }
 0x93d   :  { %v432_v31 = vadd.f32 1.0, %v1062_v30 }
 0x93f   :  { %v433_v32 = vmul.f32 0.5, %v432_v31 }
 0x941   :  { %v434_v33 = vsel %vm1158_vm4, %v1062_v30, %v433_v32 }
 0x942   :  { %437 = vrot.lane.b32.xlu0 %v434_v33, %s1084_s26  ;;  %v435_v36 = vmul.f32 %v434_v33, %v376_v17 }
 0x9b4   :  { %v438_v34 = vpop.permute.xlu0 %437 }
 0x9b5   :  { %v440_v35 = vmul.f32 %v438_v34, %v434_v33 }
 0x9b7   :  { %442 = vrot.lane.b32.xlu1 %v440_v35, %s1085_s27 }
 0xa29   :  { %v443_v14 = vpop.permute.xlu1 %442 }
 0xa2a   :  { %v445_v37 = vadd.f32 %v443_v14, %v435_v36 }
 0xa2c   :  { %1063 = vtanh.f32 %v445_v37 }
 0xa36   :  { %v1064_v38 = vpop.eup %1063 }
 0xa37   :  { %448 = vrot.lane.b32.xlu0 %v1064_v38, %s1084_s26 }
 0xaa9   :  { %v449_v39 = vpop.permute.xlu0 %448 }
 0xaaa   :  { %v451_v40 = vmul.f32 %v449_v39, %v434_v33 }
 0xaac   :  { %v452_v41 = vpack.c.bf16 %v451_v40, %v451_v40 }
 0xaae   :  { %454 = vrot.lane.b32.xlu1 %v452_v41, %s1085_s27 }
 0xb20   :  { %v455_v42 = vpop.permute.xlu1 %454 }
 0xb21   :  { %989 = vmatmul.mubr.msk.bf16.vlgmr.msra.gmra.mrb[12].mxu0 %vm85_vm1, %v455_v42 }
 0xb22   :  { %1001 = vmatpush3.bf16.msra.mxu0 %v1115_v2  ;;  %1004 = vmatprep.mubr.msk.bf16.mxu0 %vm1082_vm0, %v1081_v1 }
 0xb23   :  { %1002 = vmatprep.subr.bf16.mxu0 %v1081_v1 }
 0xb26   :  { %1003 = vmatpush3.bf16.msra.mxu0 %v1124_v4 }
 0xb27   :  { %1016 = vmatprep.subr.bf16.mxu0 %v1081_v1 }
 0xbf4   :  { %v493_v44 = vpop.f32.mrb[12].mxu0 }
 0xbf5   :  { %v499_v45 = vadd.f32 %v493_v44, %v149_v43  ;;  %v990_v46 = vpop.f32.mrb[13].mxu0  ;;  %v160_v43 = vadd.f32 %v1196_v59, %v1151_v8 }
 0xbf6   :  { %v496_v47 = vpop.f32.mrb[14].mxu0 }
 0xbf7   :  { %1065 = vtanh.f32 %v499_v45  ;;  %v991_v48 = vpop.f32.mrb[15].mxu0 }
 0xc01   :  { %v1066_v49 = vpop.eup %1065 }
 0xc02   :  { %v501_v50 = vadd.f32 1.0, %v1066_v49 }
 0xc04   :  { %v502_v51 = vmul.f32 0.5, %v501_v50 }
 0xc06   :  { %v503_v52 = vsel %vm1158_vm4, %v1066_v49, %v502_v51 }
 0xc07   :  { %506 = vrot.lane.b32.xlu0 %v503_v52, %s1084_s26  ;;  %v504_v55 = vmul.f32 %v503_v52, %v445_v37 }
 0xc79   :  { %v507_v53 = vpop.permute.xlu0 %506 }
 0xc7a   :  { %v509_v54 = vmul.f32 %v507_v53, %v503_v52 }
 0xc7c   :  { %511 = vrot.lane.b32.xlu1 %v509_v54, %s1085_s27 }
 0xcee   :  { %v512_v56 = vpop.permute.xlu1 %511 }
 0xcef   :  { %v514_v58 = vadd.f32 %v512_v56, %v504_v55  ;;  %v1045_v56 = vld [vmem:[%s1307_s1 + $0x20] sm:$0xff]  }
 0xcf1   :  { %1067 = vtanh.f32 %v514_v58 }
 0xcfb   :  { %v1068_v61 = vpop.eup %1067 }
 0xcfc   :  { %517 = vrot.lane.b32.xlu0 %v1068_v61, %s1084_s26  ;;  %v1047_v61 = vld [vmem:[%s1307_s1 + $0x30] sm:$0xff]  }
 0xd6e   :  { %v518_v62 = vpop.permute.xlu0 %517 }
 0xd6f   :  { %v520_v63 = vmul.f32 %v518_v62, %v503_v52 }
 0xd71   :  { %v521_v0 = vpack.c.bf16 %v520_v63, %v520_v63 }
 0xd73   :  { %523 = vrot.lane.b32.xlu1 %v521_v0, %s1085_s27 }
 0xde5   :  { %v524_v3 = vpop.permute.xlu1 %523 }
 0xde6   :  { %997 = vmatmul.mubr.msk.bf16.vlgmr.msra.gmra.mrb[12].mxu1 %vm85_vm1, %v524_v3 }
 0xde7   :  { %1009 = vmatpush3.bf16.msra.mxu1 %v1115_v2  ;;  %1012 = vmatprep.mubr.msk.bf16.mxu1 %vm1082_vm0, %v1081_v1 }
 0xde8   :  { %1010 = vmatprep.subr.bf16.mxu1 %v1081_v1 }
 0xdeb   :  { %1011 = vmatpush3.bf16.msra.mxu1 %v1124_v4 }
 0xdec   :  { %1024 = vmatprep.subr.bf16.mxu1 %v1081_v1 }
 0xeb9   :  { %v562_v6 = vpop.f32.mrb[12].mxu1 }
 0xeba   :  { %v568_v7 = vadd.f32 %v562_v6, %v152_v5  ;;  %v998_v10 = vpop.f32.mrb[13].mxu1  ;;  %v1048_v5 = vld [vmem:[%s1307_s1 + $0x38] sm:$0xff]   ;;  %v896_v6 = vld [vmem:[%s1309_s2 + $0x1] ss:$0 sm:$0xff] }
 0xebb   :  { %v565_v11 = vpop.f32.mrb[14].mxu1 }
 0xebc   :  { %1069 = vtanh.f32 %v568_v7  ;;  %v999_v12 = vpop.f32.mrb[15].mxu1 }
 0xec6   :  { %v1070_v13 = vpop.eup %1069 }
 0xec7   :  { %v570_v2 = vadd.f32 1.0, %v1070_v13 }
 0xec9   :  { %v571_v15 = vmul.f32 0.5, %v570_v2 }
 0xecb   :  { %v572_v16 = vsel %vm1158_vm4, %v1070_v13, %v571_v15  ;;  %v900_v15 = vld [vmem:[%s1309_s2 + $0x2] ss:$0 sm:$0xff] }
 0xecc   :  { %575 = vrot.lane.b32.xlu0 %v572_v16, %s1084_s26  ;;  %v573_v17 = vmul.f32 %v572_v16, %v514_v58 }
 0xf3e   :  { %v576_v4 = vpop.permute.xlu0 %575 }
 0xf3f   :  { %v578_v9 = vmul.f32 %v576_v4, %v572_v16 }
 0xf41   :  { %580 = vrot.lane.b32.xlu1 %v578_v9, %s1085_s27 }
 0xfb3   :  { %v581_v60 = vpop.permute.xlu1 %580 }
 0xfb4   :  { %v583_v18 = vadd.f32 %v581_v60, %v573_v17 }
 0xfb6   :  { %1071 = vtanh.f32 %v583_v18 }
 0xfc0   :  { %v1072_v19 = vpop.eup %1071 }
 0xfc1   :  { %586 = vrot.lane.b32.xlu0 %v1072_v19, %s1084_s26 }
0x1033   :  { %v587_v20 = vpop.permute.xlu0 %586 }
0x1034   :  { %v589_v21 = vmul.f32 %v587_v20, %v572_v16 }
0x1036   :  { %v590_v22 = vpack.c.bf16 %v589_v21, %v589_v21 }
0x1038   :  { %592 = vrot.lane.b32.xlu1 %v590_v22, %s1085_s27 }
0x10aa   :  { %v593_v24 = vpop.permute.xlu1 %592 }
0x10ab   :  { %1005 = vmatmul.mubr.msk.bf16.vlgmr.msra.gmra.mrb[16].mxu0 %vm85_vm1, %v593_v24 }
0x10ac   :  { %1020 = vmatprep.mubr.msk.bf16.mxu0 %vm1082_vm0, %v1081_v1  ;;  %1017 = vmatpush3.bf16.msra.mxu0 %v1045_v56 }
0x10ad   :  { %1018 = vmatprep.subr.bf16.mxu0 %v1081_v1 }
0x10b0   :  { %1019 = vmatpush3.bf16.msra.mxu0 %v1046_v23 }
0x117e   :  { %v631_v26 = vpop.f32.mrb[16].mxu0 }
0x117f   :  { %v637_v27 = vadd.f32 %v631_v26, %v157_v25  ;;  %v1006_v28 = vpop.f32.mrb[17].mxu0 }
0x1180   :  { %v634_v29 = vpop.f32.mrb[18].mxu0 }
0x1181   :  { %1073 = vtanh.f32 %v637_v27  ;;  %v1007_v30 = vpop.f32.mrb[19].mxu0 }
0x118b   :  { %v1074_v31 = vpop.eup %1073 }
0x118c   :  { %v639_v32 = vadd.f32 1.0, %v1074_v31 }
0x118e   :  { %v640_v33 = vmul.f32 0.5, %v639_v32 }
0x1190   :  { %v641_v34 = vsel %vm1158_vm4, %v1074_v31, %v640_v33 }
0x1191   :  { %644 = vrot.lane.b32.xlu0 %v641_v34, %s1084_s26  ;;  %v642_v14 = vmul.f32 %v641_v34, %v583_v18 }
0x1203   :  { %v645_v35 = vpop.permute.xlu0 %644 }
0x1204   :  { %v647_v36 = vmul.f32 %v645_v35, %v641_v34 }
0x1206   :  { %649 = vrot.lane.b32.xlu1 %v647_v36, %s1085_s27 }
0x1278   :  { %v650_v57 = vpop.permute.xlu1 %649 }
0x1279   :  { %v652_v37 = vadd.f32 %v650_v57, %v642_v14 }
0x127b   :  { %1075 = vtanh.f32 %v652_v37 }
0x1285   :  { %v1076_v38 = vpop.eup %1075 }
0x1286   :  { %655 = vrot.lane.b32.xlu0 %v1076_v38, %s1084_s26 }
0x12f8   :  { %v656_v39 = vpop.permute.xlu0 %655 }
0x12f9   :  { %v658_v40 = vmul.f32 %v656_v39, %v641_v34 }
0x12fb   :  { %v659_v41 = vpack.c.bf16 %v658_v40, %v658_v40 }
0x12fd   :  { %661 = vrot.lane.b32.xlu1 %v659_v41, %s1085_s27 }
0x136f   :  { %v662_v42 = vpop.permute.xlu1 %661 }
0x1370   :  { %1013 = vmatmul.mubr.msk.bf16.vlgmr.msra.gmra.mrb[16].mxu1 %vm85_vm1, %v662_v42 }
0x1371   :  { %1028 = vmatprep.mubr.msk.bf16.mxu1 %vm1082_vm0, %v1081_v1  ;;  %1025 = vmatpush3.bf16.msra.mxu1 %v1047_v61 }
0x1372   :  { %1026 = vmatprep.subr.bf16.mxu1 %v1081_v1 }
0x1375   :  { %1027 = vmatpush3.bf16.msra.mxu1 %v1048_v5 }
0x1443   :  { %v700_v44 = vpop.f32.mrb[16].mxu1 }
0x1444   :  { %v706_v45 = vadd.f32 %v700_v44, %v160_v43  ;;  %v1014_v46 = vpop.f32.mrb[17].mxu1 }
0x1445   :  { %v703_v47 = vpop.f32.mrb[18].mxu1 }
0x1446   :  { %1077 = vtanh.f32 %v706_v45  ;;  %v1015_v48 = vpop.f32.mrb[19].mxu1 }
0x1450   :  { %v1078_v49 = vpop.eup %1077 }
0x1451   :  { %v708_v50 = vadd.f32 1.0, %v1078_v49 }
0x1453   :  { %v709_v51 = vmul.f32 0.5, %v708_v50 }
0x1455   :  { %v710_v52 = vsel %vm1158_vm4, %v1078_v49, %v709_v51 }
0x1456   :  { %713 = vrot.lane.b32.xlu0 %v710_v52, %s1084_s26  ;;  %v711_v55 = vmul.f32 %v710_v52, %v652_v37 }
0x14c8   :  { %v714_v53 = vpop.permute.xlu0 %713 }
0x14c9   :  { %v716_v54 = vmul.f32 %v714_v53, %v710_v52 }
0x14cb   :  { %718 = vrot.lane.b32.xlu1 %v716_v54, %s1085_s27 }
0x153d   :  { %v719_v8 = vpop.permute.xlu1 %718 }
0x153e   :  { %v721_v59 = vadd.f32 %v719_v8, %v711_v55 }
0x1540   :  { %1079 = vtanh.f32 %v721_v59 }
0x154a   :  { %v1080_v58 = vpop.eup %1079 }
0x154b   :  { %724 = vrot.lane.b32.xlu0 %v1080_v58, %s1084_s26 }
0x15bd   :  { %v725_v62 = vpop.permute.xlu0 %724 }
0x15be   :  { %v727_v63 = vmul.f32 %v725_v62, %v710_v52 }
0x15c0   :  { %v728_v0 = vpack.c.bf16 %v727_v63, %v727_v63 }
0x15c2   :  { %736 = vrot.lane.b32.xlu1 %v728_v0, %s1085_s27 }
0x1634   :  { %v737_v3 = vpop.permute.xlu1 %736 }
0x1635   :  { %1021 = vmatmul.mubr.msk.bf16.vlgmr.msra.gmra.mrb[20].mxu0 %vm85_vm1, %v737_v3 }
0x1708   :  { %v787_v7 = vpop.f32.mrb[20].mxu0 }
0x1709   :  { %v788_v10 = vadd.f32 %v896_v6, %v787_v7  ;;  %v1022_v1 = vpop.f32.mrb[21].mxu0 }
0x170a   :  { %v790_v11 = vpop.f32.mrb[22].mxu0 }
0x170b   :  { %v793_v12 = vmax.f32 %v788_v10, 0.0  ;;  %v1023_v13 = vpop.f32.mrb[23].mxu0 }
0x170d   :  { %v794_v2 = vpack.c.bf16 %v793_v12, %v793_v12 }
0x170f   :  { %1029 = vmatmul.mubr.msk.bf16.vlgmr.msra.gmra.mrb[20].mxu1 %vm85_vm1, %v794_v2 }
0x17e2   :  { %v850_v16 = vpop.f32.mrb[20].mxu1 }
0x17e3   :  { %v851_v4 = vadd.f32 %v900_v15, %v850_v16  ;;  %v1030_v9 = vpop.f32.mrb[21].mxu1 }
0x17e4   :  { %v853_v17 = vpop.f32.mrb[22].mxu1 }
0x17e5   :  { %857 = vst.msk [vmem:[%s1310_s3] sm:$0xff] %vm856_vm5, %v851_v4  ;;  %v1031_v60 = vpop.f32.mrb[23].mxu1 }

</bundles_post_ra>
